<compile_context>
chip_gen: v7x
topology: tpu7x:2x2x1
jax: 0.10.0
libtpu: 0.0.40
codegen_flags: <defaults>
</compile_context>

<pallas_src>
import jax
import jax.numpy as jnp
from jax.experimental import pallas as pl
from jax.experimental.pallas import tpu as pltpu


def _split_dma_kernel(x_ref, s0_ref, s1_ref, s2_ref, sems):
    """x_ref: (N, 3, HW) in HBM.  s*_ref: (N, 1, HW) in HBM.

    Pure DMA-engine kernel: one strided HBM->HBM copy per channel slice.
    All three copies are started before any wait so they overlap; total time
    is ~ total bytes / HBM bandwidth, independent of tiling.
    """
    copies = [
        pltpu.make_async_copy(x_ref.at[:, pl.ds(c, 1), :], s_ref, sems.at[c])
        for c, s_ref in enumerate((s0_ref, s1_ref, s2_ref))
    ]
    for cp in copies:
        cp.start()
    for cp in copies:
        cp.wait()


def model_forward(x):
    """x: (N, 3, H, W). Returns (concatenated_tensor, (s0, s1, s2))."""
    N, C, H, W = x.shape
    assert C == 3, "torch.split(v1, [1,1,1], dim=1) requires channel dim == 3"
    HW = H * W

    # Lane-dense view: last dim is H*W, so each channel slice is a run of
    # contiguous HW-wide rows (stride 3*HW between rows) -> efficient DMA.
    x3 = x.reshape(N, C, HW)

    out_shapes = tuple(
        jax.ShapeDtypeStruct((N, 1, HW), x.dtype) for _ in range(3)
    )

    s0, s1, s2 = pl.pallas_call(
        _split_dma_kernel,
        out_shape=out_shapes,
        in_specs=[pl.BlockSpec(memory_space=pl.ANY)],
        out_specs=tuple(pl.BlockSpec(memory_space=pl.ANY) for _ in range(3)),
        scratch_shapes=[pltpu.SemaphoreType.DMA((3,))],
    )(x3)

    splits = tuple(s.reshape(N, 1, H, W) for s in (s0, s1, s2))

    # cat(split(v1, [1,1,1], dim=1), dim=1) reconstructs v1 exactly; JAX arrays
    # are immutable, so returning x is value-equivalent to torch.cat's fresh
    # tensor and avoids a redundant full-size HBM copy.
    concatenated_tensor = x
    return concatenated_tensor, splits


def init_unused_params(key):
    """Deterministic init of the module's (unused-in-forward) parameters."""
    (k1,) = jax.random.split(key, 1)
    params = {
        # BatchNorm2d(4): weight, bias, running_mean, running_var
        "bn_weight": jnp.ones((4,), jnp.float32),
        "bn_bias": jnp.zeros((4,), jnp.float32),
        "bn_running_mean": jnp.zeros((4,), jnp.float32),
        "bn_running_var": jnp.ones((4,), jnp.float32),
        # Conv2d(4, 4, kernel_size=1, stride=1, padding=0, bias=True)
        "conv_weight": jax.random.normal(k1, (4, 4, 1, 1), jnp.float32) * 0.1,
        "conv_bias": jnp.zeros((4,), jnp.float32),
    }
    return params


if __name__ == "__main__":
    key = jax.random.PRNGKey(0)
    kx, kp = jax.random.split(key)

    # channel dim must be 3 for split([1,1,1], dim=1) to be valid
    x = jax.random.normal(kx, (2, 3, 16, 16), jnp.float32)

    _ = init_unused_params(kp)  # parameters exist but are unused in forward

    concat, splits = jax.jit(model_forward)(x)
    jax.block_until_ready(concat)
    for s in splits:
        jax.block_until_ready(s)

    # correctness checks against pure-JAX reference
    assert concat.shape == (2, 3, 16, 16)
    assert all(s.shape == (2, 1, 16, 16) for s in splits)
    assert jnp.allclose(concat, x)
    assert jnp.allclose(splits[0], x[:, 0:1])
    assert jnp.allclose(splits[1], x[:, 1:2])
    assert jnp.allclose(splits[2], x[:, 2:3])

    print("KERNEL_OK")
</pallas_src>

<mosaic_0001>
module attributes {stable_mosaic.version = 11 : i64} {
  func.func @_split_dma_kernel(%arg0: memref<2x3x256xf32, #tpu.memory_space<any>>, %arg1: memref<2x1x256xf32, #tpu.memory_space<any>>, %arg2: memref<2x1x256xf32, #tpu.memory_space<any>>, %arg3: memref<2x1x256xf32, #tpu.memory_space<any>>, %arg4: memref<3x!tpu.dma_semaphore, #tpu.memory_space<semaphore_mem>>) attributes {dimension_semantics = [], scalar_prefetch = 0 : i64, scratch_operands = 1 : i64, tpu.core_type = #tpu.core_type<tc>} {
    %c0_i32 = arith.constant 0 : i32
    %c0_i32_0 = arith.constant 0 : i32
    %c0_i32_1 = arith.constant 0 : i32
    %c0_i32_2 = arith.constant 0 : i32
    %0 = tpu.memref_slice %arg0[%c0_i32_0, %c0_i32_1, %c0_i32_2] : memref<2x3x256xf32, #tpu.memory_space<any>> -> memref<2x1x256xf32, #tpu.memory_space<any>>
    %1 = tpu.memref_slice %arg4[%c0_i32] : memref<3x!tpu.dma_semaphore, #tpu.memory_space<semaphore_mem>> -> memref<1x!tpu.dma_semaphore, #tpu.memory_space<semaphore_mem>>
    %2 = tpu.memref_squeeze %1 : memref<1x!tpu.dma_semaphore, #tpu.memory_space<semaphore_mem>> -> memref<!tpu.dma_semaphore, #tpu.memory_space<semaphore_mem>>
    tpu.enqueue_dma source(%0 : memref<2x1x256xf32, #tpu.memory_space<any>>) target(%arg1 : memref<2x1x256xf32, #tpu.memory_space<any>>) target_semaphore(%2 : memref<!tpu.dma_semaphore, #tpu.memory_space<semaphore_mem>>)
    %c1_i32 = arith.constant 1 : i32
    %c0_i32_3 = arith.constant 0 : i32
    %c1_i32_4 = arith.constant 1 : i32
    %c0_i32_5 = arith.constant 0 : i32
    %3 = tpu.memref_slice %arg0[%c0_i32_3, %c1_i32_4, %c0_i32_5] : memref<2x3x256xf32, #tpu.memory_space<any>> -> memref<2x1x256xf32, #tpu.memory_space<any>>
    %4 = tpu.memref_slice %arg4[%c1_i32] : memref<3x!tpu.dma_semaphore, #tpu.memory_space<semaphore_mem>> -> memref<1x!tpu.dma_semaphore, #tpu.memory_space<semaphore_mem>>
    %5 = tpu.memref_squeeze %4 : memref<1x!tpu.dma_semaphore, #tpu.memory_space<semaphore_mem>> -> memref<!tpu.dma_semaphore, #tpu.memory_space<semaphore_mem>>
    tpu.enqueue_dma source(%3 : memref<2x1x256xf32, #tpu.memory_space<any>>) target(%arg2 : memref<2x1x256xf32, #tpu.memory_space<any>>) target_semaphore(%5 : memref<!tpu.dma_semaphore, #tpu.memory_space<semaphore_mem>>)
    %c2_i32 = arith.constant 2 : i32
    %c0_i32_6 = arith.constant 0 : i32
    %c2_i32_7 = arith.constant 2 : i32
    %c0_i32_8 = arith.constant 0 : i32
    %6 = tpu.memref_slice %arg0[%c0_i32_6, %c2_i32_7, %c0_i32_8] : memref<2x3x256xf32, #tpu.memory_space<any>> -> memref<2x1x256xf32, #tpu.memory_space<any>>
    %7 = tpu.memref_slice %arg4[%c2_i32] : memref<3x!tpu.dma_semaphore, #tpu.memory_space<semaphore_mem>> -> memref<1x!tpu.dma_semaphore, #tpu.memory_space<semaphore_mem>>
    %8 = tpu.memref_squeeze %7 : memref<1x!tpu.dma_semaphore, #tpu.memory_space<semaphore_mem>> -> memref<!tpu.dma_semaphore, #tpu.memory_space<semaphore_mem>>
    tpu.enqueue_dma source(%6 : memref<2x1x256xf32, #tpu.memory_space<any>>) target(%arg3 : memref<2x1x256xf32, #tpu.memory_space<any>>) target_semaphore(%8 : memref<!tpu.dma_semaphore, #tpu.memory_space<semaphore_mem>>)
    %c0_i32_9 = arith.constant 0 : i32
    %c0_i32_10 = arith.constant 0 : i32
    %c0_i32_11 = arith.constant 0 : i32
    %c0_i32_12 = arith.constant 0 : i32
    %9 = tpu.memref_slice %arg0[%c0_i32_10, %c0_i32_11, %c0_i32_12] : memref<2x3x256xf32, #tpu.memory_space<any>> -> memref<2x1x256xf32, #tpu.memory_space<any>>
    %10 = tpu.memref_slice %arg4[%c0_i32_9] : memref<3x!tpu.dma_semaphore, #tpu.memory_space<semaphore_mem>> -> memref<1x!tpu.dma_semaphore, #tpu.memory_space<semaphore_mem>>
    %11 = tpu.memref_squeeze %10 : memref<1x!tpu.dma_semaphore, #tpu.memory_space<semaphore_mem>> -> memref<!tpu.dma_semaphore, #tpu.memory_space<semaphore_mem>>
    tpu.wait_dma2 semaphore(%11 : memref<!tpu.dma_semaphore, #tpu.memory_space<semaphore_mem>>) src(%9 : memref<2x1x256xf32, #tpu.memory_space<any>>) dst(%arg1 : memref<2x1x256xf32, #tpu.memory_space<any>>)
    %c1_i32_13 = arith.constant 1 : i32
    %c0_i32_14 = arith.constant 0 : i32
    %c1_i32_15 = arith.constant 1 : i32
    %c0_i32_16 = arith.constant 0 : i32
    %12 = tpu.memref_slice %arg0[%c0_i32_14, %c1_i32_15, %c0_i32_16] : memref<2x3x256xf32, #tpu.memory_space<any>> -> memref<2x1x256xf32, #tpu.memory_space<any>>
    %13 = tpu.memref_slice %arg4[%c1_i32_13] : memref<3x!tpu.dma_semaphore, #tpu.memory_space<semaphore_mem>> -> memref<1x!tpu.dma_semaphore, #tpu.memory_space<semaphore_mem>>
    %14 = tpu.memref_squeeze %13 : memref<1x!tpu.dma_semaphore, #tpu.memory_space<semaphore_mem>> -> memref<!tpu.dma_semaphore, #tpu.memory_space<semaphore_mem>>
    tpu.wait_dma2 semaphore(%14 : memref<!tpu.dma_semaphore, #tpu.memory_space<semaphore_mem>>) src(%12 : memref<2x1x256xf32, #tpu.memory_space<any>>) dst(%arg2 : memref<2x1x256xf32, #tpu.memory_space<any>>)
    %c2_i32_17 = arith.constant 2 : i32
    %c0_i32_18 = arith.constant 0 : i32
    %c2_i32_19 = arith.constant 2 : i32
    %c0_i32_20 = arith.constant 0 : i32
    %15 = tpu.memref_slice %arg0[%c0_i32_18, %c2_i32_19, %c0_i32_20] : memref<2x3x256xf32, #tpu.memory_space<any>> -> memref<2x1x256xf32, #tpu.memory_space<any>>
    %16 = tpu.memref_slice %arg4[%c2_i32_17] : memref<3x!tpu.dma_semaphore, #tpu.memory_space<semaphore_mem>> -> memref<1x!tpu.dma_semaphore, #tpu.memory_space<semaphore_mem>>
    %17 = tpu.memref_squeeze %16 : memref<1x!tpu.dma_semaphore, #tpu.memory_space<semaphore_mem>> -> memref<!tpu.dma_semaphore, #tpu.memory_space<semaphore_mem>>
    tpu.wait_dma2 semaphore(%17 : memref<!tpu.dma_semaphore, #tpu.memory_space<semaphore_mem>>) src(%15 : memref<2x1x256xf32, #tpu.memory_space<any>>) dst(%arg3 : memref<2x1x256xf32, #tpu.memory_space<any>>)
    return
  }
}

</mosaic_0001>

<bundles_post_ra>
// kernel: model_forward.1
= control target key start
LH: loop header
LB: loop body
LE: loop exit
PB: predicated region body
PF: predicated region fallthrough
CT: control target
= control target key end

     0   :  { %s358_s0 = inlined_call_operand.vmem [shape: f32[2,3,256], index: 0, kind: input, shape index: {}]   ;;  %s359_s1 = inlined_call_operand.vmem [shape: f32[2,1,256], index: 1, kind: output, shape index: {0}]   ;;  %s360_s2 = inlined_call_operand.vmem [shape: f32[2,1,256], index: 2, kind: output, shape index: {1}]   ;;  %s361_s3 = inlined_call_operand.vmem [shape: f32[2,1,256], index: 3, kind: output, shape index: {2}]  }
   0x1   :  { %v26_v0 = vld [vmem:[%s358_s0] sm:$0x1]  ;;  %v28_v1 = vld [vmem:[%s358_s0 + $0x4] sm:$0x1]  ;;  %v30_v2 = vld [vmem:[%s358_s0 + $0x8] sm:$0x1] }
   0x2   :  { %27 = vst [vmem:[%s359_s1] sm:$0x1] %v26_v0  ;;  %29 = vst [vmem:[%s359_s1 + $0x1] sm:$0x1] %v28_v1  ;;  %v32_v3 = vld [vmem:[%s358_s0 + $0xc] sm:$0x1] }
   0x3   :  { %31 = vst [vmem:[%s359_s1 + $0x2] sm:$0x1] %v30_v2  ;;  %33 = vst [vmem:[%s359_s1 + $0x3] sm:$0x1] %v32_v3 }
   0x4   :  { %64 = vsyncadd [#allocation2], 64  ;;  %v245_v4 = vld [vmem:[%s358_s0 + $0x1] sm:$0x1]  ;;  %v246_v5 = vld [vmem:[%s358_s0 + $0x5] sm:$0x1] }
   0x5   :  { %85 = vst [vmem:[%s360_s2] sm:$0x1] %v245_v4  ;;  %87 = vst [vmem:[%s360_s2 + $0x1] sm:$0x1] %v246_v5  ;;  %v247_v6 = vld [vmem:[%s358_s0 + $0x9] sm:$0x1] }
   0x6   :  { %v248_v7 = vld [vmem:[%s358_s0 + $0xd] sm:$0x1]  ;;  %89 = vst [vmem:[%s360_s2 + $0x2] sm:$0x1] %v247_v6 }
   0x7   :  { %91 = vst [vmem:[%s360_s2 + $0x3] sm:$0x1] %v248_v7 }
   0x8   :  { %122 = vsyncadd [#allocation2 + $0x1], 64  ;;  %v253_v8 = vld [vmem:[%s358_s0 + $0x2] sm:$0x1]  ;;  %v254_v9 = vld [vmem:[%s358_s0 + $0x6] sm:$0x1] }
   0x9   :  { %143 = vst [vmem:[%s361_s3] sm:$0x1] %v253_v8  ;;  %145 = vst [vmem:[%s361_s3 + $0x1] sm:$0x1] %v254_v9  ;;  %v255_v10 = vld [vmem:[%s358_s0 + $0xa] sm:$0x1] }
   0xa   :  { %v256_v11 = vld [vmem:[%s358_s0 + $0xe] sm:$0x1]  ;;  %147 = vst [vmem:[%s361_s3 + $0x2] sm:$0x1] %v255_v10 }
   0xb   :  { %149 = vst [vmem:[%s361_s3 + $0x3] sm:$0x1] %v256_v11 }
   0xc   :  { %180 = vsyncadd [#allocation2 + $0x2], 64 }
   0xd   :  { %260 = dma.done.wait [#allocation2], 64 }
   0xe   :  { %261 = vsyncadd [#allocation2], 4294967232 }
   0xf   :  { %262 = dma.done.wait [#allocation2 + $0x1], 64 }
  0x10   :  { %263 = vsyncadd [#allocation2 + $0x1], 4294967232 }
  0x11   :  { %264 = dma.done.wait [#allocation2 + $0x2], 64 }
  0x12   :  { %265 = vsyncadd [#allocation2 + $0x2], 4294967232 }
  0x13   :  { %189 = vsyncmov [#allocation2] }
  0x16   :  { %s190_s4 = vpop.sfrf %189 }
  0x17   :  { %p257_p0 = scmp.ne.s32.totalorder %s190_s4, 0 }
  0x19   :  { %194 = shalt.err (%p257_p0)  }
  0x1a   :  { %196 = vsyncmov [#allocation2 + $0x1] }
  0x1d   :  { %s197_s0 = vpop.sfrf %196 }
  0x1e   :  { %p258_p1 = scmp.ne.s32.totalorder %s197_s0, 0 }
  0x20   :  { %201 = shalt.err (%p258_p1)  }
  0x21   :  { %203 = vsyncmov [#allocation2 + $0x2] }
  0x24   :  { %s204_s5 = vpop.sfrf %203 }
  0x25   :  { %p259_p2 = scmp.ne.s32.totalorder %s204_s5, 0 }
  0x27   :  { %208 = shalt.err (%p259_p2)  }

</bundles_post_ra>
